<compile_context>
chip_gen: v5e
topology: v5e:2x2
jax: 0.10.0
libtpu: 0.0.40
codegen_flags: <defaults>
</compile_context>

<pallas_src>
import functools

import jax
import jax.numpy as jnp
from jax import lax
from jax.experimental import pallas as pl
from jax.experimental.pallas import tpu as pltpu


def _linear_relu_fused_kernel(x_ref, w_ref, b_ref, o_ref):
    # Single-K-tile path: whole contraction in one MXU dot, then bias + ReLU.
    # x_ref: (tm, tk), w_ref: (tn, tk) in PyTorch (Out, In) layout,
    # b_ref: (1, tn), o_ref: (tm, tn) lane-dense.
    acc = lax.dot_general(
        x_ref[...],
        w_ref[...],
        dimension_numbers=(((1,), (1,)), ((), ())),
        preferred_element_type=jnp.float32,
    )
    o_ref[...] = jnp.maximum(acc + b_ref[...], 0.0).astype(o_ref.dtype)


def _linear_relu_ktiled_kernel(x_ref, w_ref, b_ref, o_ref, acc_ref):
    # General path: accumulate over K grid steps in an f32 VMEM scratch.
    k = pl.program_id(2)

    @pl.when(k == 0)
    def _():
        acc_ref[...] = jnp.zeros_like(acc_ref)

    acc_ref[...] += lax.dot_general(
        x_ref[...],
        w_ref[...],
        dimension_numbers=(((1,), (1,)), ((), ())),
        preferred_element_type=jnp.float32,
    )

    @pl.when(k == pl.num_programs(2) - 1)
    def _():
        o_ref[...] = jnp.maximum(acc_ref[...] + b_ref[...], 0.0).astype(o_ref.dtype)


def _round_up(x: int, m: int) -> int:
    return ((x + m - 1) // m) * m


@functools.partial(jax.jit, static_argnames=("tm", "tn", "tk"))
def model_mock_forward(x, weight, bias, *, tm=None, tn=None, tk=None):
    """ReLU(x @ weight.T + bias).

    x:      (B, In)   float32
    weight: (Out, In) float32   (PyTorch nn.Linear layout — NOT transposed)
    bias:   (Out,)    float32
    """
    B, In = x.shape
    Out, In_w = weight.shape
    assert In == In_w, (In, In_w)

    # Tile sizes: aligned to the (8, 128) f32 vreg grain, lane-dense output
    # (tn multiple of 128).  tk up to 2048 so typical hidden sizes take the
    # fused single-K path; double-buffered blocks stay well under the 32 MiB
    # scoped-VMEM default.
    tm = tm if tm is not None else min(256, _round_up(B, 8))
    tn = tn if tn is not None else min(256, _round_up(Out, 128))
    tk = tk if tk is not None else min(2048, _round_up(In, 128))

    Bp = _round_up(B, tm)
    Np = _round_up(Out, tn)
    Kp = _round_up(In, tk)

    # Zero-pad to tile multiples. Padded K columns multiply by zero weights,
    # so they do not change the result; padded rows/cols are sliced off below.
    x_p = jnp.pad(x, ((0, Bp - B), (0, Kp - In)))
    w_p = jnp.pad(weight, ((0, Np - Out), (0, Kp - In)))
    b_p = jnp.pad(bias, (0, Np - Out)).reshape(1, Np)

    if Kp == tk:
        # Fused single-K path: no accumulator scratch, no K grid axis.
        grid = (Bp // tm, Np // tn)
        out = pl.pallas_call(
            _linear_relu_fused_kernel,
            out_shape=jax.ShapeDtypeStruct((Bp, Np), x.dtype),
            grid_spec=pltpu.PrefetchScalarGridSpec(
                num_scalar_prefetch=0,
                grid=grid,
                in_specs=[
                    pl.BlockSpec((tm, tk), lambda i, j: (i, 0)),   # x
                    pl.BlockSpec((tn, tk), lambda i, j: (j, 0)),   # weight (Out, In)
                    pl.BlockSpec((1, tn), lambda i, j: (0, j)),    # bias
                ],
                out_specs=pl.BlockSpec((tm, tn), lambda i, j: (i, j)),
            ),
            compiler_params=pltpu.CompilerParams(
                dimension_semantics=("parallel", "parallel"),
            ),
        )(x_p, w_p, b_p)
    else:
        # General K-tiled path with resident accumulator.
        grid = (Bp // tm, Np // tn, Kp // tk)
        out = pl.pallas_call(
            _linear_relu_ktiled_kernel,
            out_shape=jax.ShapeDtypeStruct((Bp, Np), x.dtype),
            grid_spec=pltpu.PrefetchScalarGridSpec(
                num_scalar_prefetch=0,
                grid=grid,
                in_specs=[
                    pl.BlockSpec((tm, tk), lambda i, j, k: (i, k)),   # x
                    pl.BlockSpec((tn, tk), lambda i, j, k: (j, k)),   # weight (Out, In)
                    pl.BlockSpec((1, tn), lambda i, j, k: (0, j)),    # bias
                ],
                out_specs=pl.BlockSpec((tm, tn), lambda i, j, k: (i, j)),
                scratch_shapes=[pltpu.VMEM((tm, tn), jnp.float32)],
            ),
            compiler_params=pltpu.CompilerParams(
                # M/N tiles are independent -> shardable across v7x's 2 TCs;
                # K is the accumulator/reduction axis and must stay "arbitrary".
                dimension_semantics=("parallel", "parallel", "arbitrary"),
            ),
        )(x_p, w_p, b_p)

    return out[:B, :Out]


if __name__ == "__main__":
    key = jax.random.PRNGKey(0)
    k_x, k_w, k_b = jax.random.split(key, 3)

    input_size, output_size, batch = 10, 2, 8

    # Deterministic parameter init (mimics nn.Linear's uniform(-1/sqrt(in), 1/sqrt(in)))
    bound = 1.0 / (input_size ** 0.5)
    weight = jax.random.uniform(
        k_w, (output_size, input_size), jnp.float32, -bound, bound
    )
    bias = jax.random.uniform(k_b, (output_size,), jnp.float32, -bound, bound)

    x = jax.random.normal(k_x, (batch, input_size), jnp.float32)

    out = model_mock_forward(x, weight, bias)
    jax.block_until_ready(out)

    # Reference check against plain JAX (fused single-K path).
    ref = jnp.maximum(x @ weight.T + bias, 0.0)
    assert out.shape == (batch, output_size)
    assert jnp.allclose(out, ref, atol=1e-5, rtol=1e-5), (
        jnp.max(jnp.abs(out - ref))
    )

    # Also exercise the general multi-tile K-accumulation path.
    B2, In2, Out2 = 384, 1024, 320
    k_x2, k_w2, k_b2 = jax.random.split(jax.random.PRNGKey(1), 3)
    x2 = jax.random.normal(k_x2, (B2, In2), jnp.float32)
    w2 = jax.random.normal(k_w2, (Out2, In2), jnp.float32) * 0.02
    b2 = jax.random.normal(k_b2, (Out2,), jnp.float32) * 0.02
    out2 = model_mock_forward(x2, w2, b2, tm=128, tn=128, tk=256)
    jax.block_until_ready(out2)
    ref2 = jnp.maximum(x2 @ w2.T + b2, 0.0)
    assert jnp.allclose(out2, ref2, atol=1e-3, rtol=1e-3)

    print("KERNEL_OK")
</pallas_src>

<mosaic_0001>
module attributes {stable_mosaic.version = 11 : i64} {
  func.func @_linear_relu_fused_kernel(%arg0: i32, %arg1: i32, %arg2: memref<8x128xf32, #tpu.memory_space<vmem>>, %arg3: memref<128x128xf32, #tpu.memory_space<vmem>>, %arg4: memref<1x128xf32, #tpu.memory_space<vmem>>, %arg5: memref<8x128xf32, #tpu.memory_space<vmem>>) attributes {dimension_semantics = [#tpu.dimension_semantics<parallel>, #tpu.dimension_semantics<parallel>], iteration_bounds = array<i64: 1, 1>, scalar_prefetch = 0 : i64, scratch_operands = 0 : i64, tpu.core_type = #tpu.core_type<tc>, window_params = [{transform_indices = @transform_0, window_bounds = array<i64: 8, 128>}, {transform_indices = @transform_1, window_bounds = array<i64: 128, 128>}, {transform_indices = @transform_2, window_bounds = array<i64: 1, 128>}, {transform_indices = @transform_3, window_bounds = array<i64: 8, 128>}]} {
    %c0 = arith.constant 0 : index
    %c0_0 = arith.constant 0 : index
    %0 = vector.load %arg2[%c0, %c0_0] : memref<8x128xf32, #tpu.memory_space<vmem>>, vector<8x128xf32>
    %c0_1 = arith.constant 0 : index
    %c0_2 = arith.constant 0 : index
    %1 = vector.load %arg3[%c0_1, %c0_2] : memref<128x128xf32, #tpu.memory_space<vmem>>, vector<128x128xf32>
    %cst = arith.constant dense<0.000000e+00> : vector<8x128xf32>
    %2 = tpu.matmul %0, %1, %cst {dimension_numbers = #tpu.dot_dimension_numbers<[1], [1], [0], [0], [0, 0, 1, 0], [], []>} : vector<8x128xf32>, vector<128x128xf32>, vector<8x128xf32> -> vector<8x128xf32>
    %c0_3 = arith.constant 0 : index
    %c0_4 = arith.constant 0 : index
    %3 = vector.load %arg4[%c0_3, %c0_4] : memref<1x128xf32, #tpu.memory_space<vmem>>, vector<1x128xf32>
    %4 = vector.broadcast %3 : vector<1x128xf32> to vector<8x128xf32>
    %5 = arith.addf %2, %4 : vector<8x128xf32>
    %cst_5 = arith.constant 0.000000e+00 : f32
    %6 = vector.broadcast %cst_5 : f32 to vector<8x128xf32>
    %7 = arith.maximumf %5, %6 : vector<8x128xf32>
    %c0_6 = arith.constant 0 : index
    %c0_7 = arith.constant 0 : index
    %8 = vector.load %arg5[%c0_6, %c0_7] : memref<8x128xf32, #tpu.memory_space<vmem>>, vector<8x128xf32>
    tpu.vector_store %arg5[%c0_6, %c0_7], %7 {strides = array<i32>} : memref<8x128xf32, #tpu.memory_space<vmem>>, vector<8x128xf32>,
    return
  }
  func.func @transform_0(%arg0: i32, %arg1: i32) -> (i32, i32) {
    %c0_i32 = arith.constant 0 : i32
    %c0_i32_0 = arith.constant 0 : i32
    return %arg0, %c0_i32 : i32, i32
  }
  func.func @transform_1(%arg0: i32, %arg1: i32) -> (i32, i32) {
    %c0_i32 = arith.constant 0 : i32
    %c0_i32_0 = arith.constant 0 : i32
    return %arg1, %c0_i32 : i32, i32
  }
  func.func @transform_2(%arg0: i32, %arg1: i32) -> (i32, i32) {
    %c0_i32 = arith.constant 0 : i32
    %c0_i32_0 = arith.constant 0 : i32
    return %c0_i32, %arg1 : i32, i32
  }
  func.func @transform_3(%arg0: i32, %arg1: i32) -> (i32, i32) {
    %c0_i32 = arith.constant 0 : i32
    return %arg0, %arg1 : i32, i32
  }
}

</mosaic_0001>

<bundles_post_ra>
// kernel: model_mock_forward.1
= control target key start
LH: loop header
LB: loop body
LE: loop exit
PB: predicated region body
PF: predicated region fallthrough
CT: control target
= control target key end

     0   :  { %s139_s1 = inlined_call_operand.vmem [shape: f32[128,128], index: 1, kind: input, shape index: {}]   ;;  %s140_s2 = inlined_call_operand.vmem [shape: f32[1,128], index: 2, kind: input, shape index: {}]   ;;  %s141_s0 = inlined_call_operand.vmem [shape: f32[8,128], index: 0, kind: input, shape index: {}]   ;;  %s142_s3 = inlined_call_operand.vmem [shape: f32[8,128], index: 3, kind: output, shape index: {}]  }
   0x1   :  { %v30_v0 = vld [vmem:[%s139_s1 + $0x78] sm:$0xff]  ;;  %v29_v1 = vld [vmem:[%s139_s1 + $0x70] sm:$0xff]  ;;  %v28_v2 = vld [vmem:[%s139_s1 + $0x68] sm:$0xff] }
   0x2   :  { %35 = vmatpush.xpose.msra.mxu0 %v30_v0  ;;  %v27_v3 = vld [vmem:[%s139_s1 + $0x60] sm:$0xff]  ;;  %v26_v4 = vld [vmem:[%s139_s1 + $0x58] sm:$0xff]  ;;  %v25_v5 = vld [vmem:[%s139_s1 + $0x50] sm:$0xff] }
   0x3   :  { %v24_v6 = vld [vmem:[%s139_s1 + $0x48] sm:$0xff]  ;;  %v23_v7 = vld [vmem:[%s139_s1 + $0x40] sm:$0xff]  ;;  %v22_v8 = vld [vmem:[%s139_s1 + $0x38] sm:$0xff] }
   0x4   :  { %v21_v9 = vld [vmem:[%s139_s1 + $0x30] sm:$0xff]  ;;  %v20_v10 = vld [vmem:[%s139_s1 + $0x28] sm:$0xff]  ;;  %v19_v11 = vld [vmem:[%s139_s1 + $0x20] sm:$0xff] }
   0x5   :  { %v18_v12 = vld [vmem:[%s139_s1 + $0x18] sm:$0xff]  ;;  %v17_v13 = vld [vmem:[%s139_s1 + $0x10] sm:$0xff]  ;;  %v16_v14 = vld [vmem:[%s139_s1 + $0x8] sm:$0xff] }
   0x6   :  { %36 = vmatpush.xpose.msra.mxu0 %v29_v1  ;;  %v15_v15 = vld [vmem:[%s139_s1] sm:$0xff] }
   0x7   :  { %v14_v16 = vld [vmem:[%s141_s0] sm:$0xff] }
   0x8   :  { %v61_v17 = vld [vmem:[%s140_s2] ss:$0 sm:$0xff] }
   0xa   :  { %37 = vmatpush.xpose.msra.mxu0 %v28_v2 }
   0xe   :  { %38 = vmatpush.xpose.msra.mxu0 %v27_v3 }
  0x12   :  { %39 = vmatpush.xpose.msra.mxu0 %v26_v4 }
  0x16   :  { %40 = vmatpush.xpose.msra.mxu0 %v25_v5 }
  0x1a   :  { %41 = vmatpush.xpose.msra.mxu0 %v24_v6 }
  0x1e   :  { %42 = vmatpush.xpose.msra.mxu0 %v23_v7 }
  0x22   :  { %43 = vmatpush.xpose.msra.mxu0 %v22_v8 }
  0x26   :  { %44 = vmatpush.xpose.msra.mxu0 %v21_v9 }
  0x2a   :  { %45 = vmatpush.xpose.msra.mxu0 %v20_v10 }
  0x2e   :  { %46 = vmatpush.xpose.msra.mxu0 %v19_v11 }
  0x32   :  { %47 = vmatpush.xpose.msra.mxu0 %v18_v12 }
  0x36   :  { %48 = vmatpush.xpose.msra.mxu0 %v17_v13 }
  0x3a   :  { %49 = vmatpush.xpose.msra.mxu0 %v16_v14 }
  0x3e   :  { %50 = vmatpush.xpose.msra.mxu0 %v15_v15 }
  0x41   :  { %51 = vmatmul.f32.vlgmr.msra.gmra.mxu0 %v14_v16 }
  0xbe   :  { %v52_v18 = vpop.f32.mrf.mxu0 }
  0xbf   :  { %v53_v19 = vadd.f32 %v61_v17, %v52_v18 }
  0xc1   :  { %v55_v20 = vmax.f32 %v53_v19, 0.0 }
  0xc3   :  { %56 = vst [vmem:[%s142_s3] sm:$0xff] %v55_v20 }

</bundles_post_ra>
